<compile_context>
chip_gen: v5e
topology: v5e:2x2
jax: 0.10.0
libtpu: 0.0.40
codegen_flags: <defaults>
</compile_context>

<pallas_src>
import functools
import math

import jax
import jax.numpy as jnp
from jax.experimental import pallas as pl
from jax.experimental.pallas import tpu as pltpu


def _round_up(x, m):
    return ((x + m - 1) // m) * m


def _pick_tm(n_pad):
    # Prefer an even row-tile count >= 2 so v7x's two TensorCores split evenly.
    for t in (512, 256, 128):
        if n_pad % t == 0 and (n_pad // t) >= 2 and (n_pad // t) % 2 == 0:
            return t
    for t in (512, 256, 128):
        if n_pad % t == 0:
            return t
    return 128


def _pick_tk(n_pad):
    for t in (1024, 512, 256, 128):
        if n_pad % t == 0:
            return t
    return 128


# --------------------------------------------------------------------------
# Stage 1: support = x @ weight   (row-tiled; weight resident in VMEM)
# --------------------------------------------------------------------------
def _support_kernel(x_ref, w_ref, out_ref):
    out_ref[...] = jnp.dot(
        x_ref[...], w_ref[...], preferred_element_type=jnp.float32
    ).astype(out_ref.dtype)


# --------------------------------------------------------------------------
# Stage 2: out = adj @ support + bias
#   grid = (row_tiles, k_tiles); k (reduction) is the LAST grid axis.
#   adj and support are both pipelined (support k-tiled); out is f32 with a
#   constant block index along k, so we accumulate directly into it.
# --------------------------------------------------------------------------
def _aggregate_kernel(adj_ref, sup_ref, b_ref, out_ref):
    k = pl.program_id(1)

    sup = sup_ref[...]
    adj_tile = adj_ref[...]
    if adj_tile.dtype != sup.dtype:          # static (trace-time) decision
        adj_tile = adj_tile.astype(sup.dtype)
    partial = jnp.dot(adj_tile, sup, preferred_element_type=jnp.float32)

    @pl.when(k == 0)
    def _init():
        out_ref[...] = partial

    @pl.when(k > 0)
    def _accumulate():
        out_ref[...] += partial

    @pl.when(k == pl.num_programs(1) - 1)
    def _add_bias():
        out_ref[...] += b_ref[...]


@functools.partial(jax.jit, static_argnames=("compute_dtype",))
def _graph_convolution_impl(x, adj, weight, bias2d, *, compute_dtype):
    n, in_f = x.shape
    n_adj = adj.shape[0]
    out_f = weight.shape[1]

    # ---- TPU-friendly padded shapes --------------------------------------
    n_pad = _round_up(max(n_adj, 128), 128)        # rows/cols of adj
    in_pad = _round_up(in_f, 8)                    # sublane alignment
    out_pad = _round_up(max(out_f, 128), 128)      # lane-dense output dim

    # Small operands: pad/cast is O(N*feat), negligible next to adj's O(N^2).
    x_p = jnp.pad(x.astype(jnp.float32),
                  ((0, n_pad - n), (0, in_pad - in_f))).astype(compute_dtype)
    w_p = jnp.pad(weight.astype(jnp.float32),
                  ((0, in_pad - in_f), (0, out_pad - out_f))).astype(compute_dtype)
    b_p = jnp.pad(bias2d.astype(jnp.float32),
                  ((0, 0), (0, out_pad - out_f)))

    # adj: pad only when needed (no-op if caller pre-padded via
    # prepare_adjacency) and do NOT cast here — the kernel casts per tile.
    if n_adj != n_pad:
        adj_p = jnp.pad(adj, ((0, n_pad - n_adj), (0, n_pad - n_adj)))
    else:
        adj_p = adj

    # ---- tile sizes --------------------------------------------------------
    tm = _pick_tm(n_pad)   # adj/out row stripe
    tk = _pick_tk(n_pad)   # adj reduction chunk (== support row chunk)

    # ---- stage 1: support = x @ W  -> (n_pad, out_pad) in compute_dtype ----
    support = pl.pallas_call(
        _support_kernel,
        out_shape=jax.ShapeDtypeStruct((n_pad, out_pad), compute_dtype),
        grid_spec=pltpu.PrefetchScalarGridSpec(
            num_scalar_prefetch=0,
            grid=(n_pad // tm,),
            in_specs=[
                pl.BlockSpec((tm, in_pad), lambda i: (i, 0)),
                pl.BlockSpec((in_pad, out_pad), lambda i: (0, 0)),  # resident
            ],
            out_specs=pl.BlockSpec((tm, out_pad), lambda i: (i, 0)),
        ),
        compiler_params=pltpu.CompilerParams(
            dimension_semantics=("parallel",)),
    )(x_p, w_p)

    # ---- stage 2: out = adj @ support + bias (tiled + pipelined) -----------
    out_p = pl.pallas_call(
        _aggregate_kernel,
        out_shape=jax.ShapeDtypeStruct((n_pad, out_pad), jnp.float32),
        grid_spec=pltpu.PrefetchScalarGridSpec(
            num_scalar_prefetch=0,
            grid=(n_pad // tm, n_pad // tk),
            in_specs=[
                pl.BlockSpec((tm, tk), lambda i, k: (i, k)),        # adj tile
                pl.BlockSpec((tk, out_pad), lambda i, k: (k, 0)),   # support (k-tiled)
                pl.BlockSpec((1, out_pad), lambda i, k: (0, 0)),    # bias
            ],
            out_specs=pl.BlockSpec((tm, out_pad), lambda i, k: (i, 0)),
        ),
        compiler_params=pltpu.CompilerParams(
            dimension_semantics=("parallel", "arbitrary")),
    )(adj_p, support, b_p)

    return out_p[:n, :out_f]


def prepare_adjacency(adj, compute_dtype=jnp.bfloat16):
    """Pad + cast the N^2 adjacency ONCE; reuse across GCN layers/steps.

    bf16 is exact for 0/1 adjacencies; keep float32 for normalized adjacency.
    """
    n = adj.shape[0]
    n_pad = _round_up(max(n, 128), 128)
    if n_pad != n:
        adj = jnp.pad(adj, ((0, n_pad - n), (0, n_pad - n)))
    return adj.astype(compute_dtype)


def graph_convolution(x, adj, weight, bias=None, *, compute_dtype=jnp.bfloat16):
    """GraphConvolution forward: adj @ (x @ weight) + bias.

    x: [N, in_f]; adj: [N, N] dense (torch.spmm semantics == dense matmul),
    optionally pre-padded/pre-cast via prepare_adjacency; weight: [in_f, out_f];
    bias: [out_f] or None.  Returns [N, out_f] float32.
    Use compute_dtype=jnp.float32 for the exact path (normalized adjacency).
    """
    out_f = weight.shape[1]
    if bias is None:
        bias2d = jnp.zeros((1, out_f), jnp.float32)
    else:
        bias2d = jnp.asarray(bias).reshape(1, out_f)
    return _graph_convolution_impl(x, adj, weight, bias2d,
                                   compute_dtype=compute_dtype)


if __name__ == "__main__":
    # Small shapes implied by the module: N nodes, in_features -> out_features.
    N, IN_F, OUT_F = 64, 32, 16

    key = jax.random.PRNGKey(0)
    k_x, k_adj, k_w, k_b = jax.random.split(key, 4)

    # Deterministic "reset_parameters": uniform(-stdv, stdv), stdv = 1/sqrt(out_f)
    stdv = 1.0 / math.sqrt(OUT_F)
    weight = jax.random.uniform(k_w, (IN_F, OUT_F), jnp.float32, -stdv, stdv)
    bias = jax.random.uniform(k_b, (OUT_F,), jnp.float32, -stdv, stdv)

    x = jax.random.normal(k_x, (N, IN_F), jnp.float32)
    # Dense 0/1 adjacency with self-loops (spmm with sparse adj == dense matmul).
    adj = (jax.random.uniform(k_adj, (N, N), jnp.float32) < 0.2).astype(jnp.float32)
    adj = adj + jnp.eye(N, dtype=jnp.float32)

    ref = adj @ (x @ weight) + bias[None, :]

    # Exact f32 path.
    out_f32 = jax.block_until_ready(
        graph_convolution(x, adj, weight, bias, compute_dtype=jnp.float32))
    assert out_f32.shape == (N, OUT_F)
    assert jnp.allclose(out_f32, ref, atol=1e-4, rtol=1e-4), "f32 mismatch"

    # Default path: adj streamed f32, cast to bf16 per tile inside the kernel.
    out_bf16 = jax.block_until_ready(graph_convolution(x, adj, weight, bias))
    assert out_bf16.shape == (N, OUT_F)
    assert jnp.allclose(out_bf16, ref, atol=5e-2, rtol=5e-2), "bf16 mismatch"

    # Cached-adjacency path: pad+cast once, reuse across layers (option (a)).
    adj_cached = prepare_adjacency(adj, jnp.bfloat16)
    out_cached = jax.block_until_ready(graph_convolution(x, adj_cached, weight, bias))
    assert out_cached.shape == (N, OUT_F)
    assert jnp.allclose(out_cached, ref, atol=5e-2, rtol=5e-2), "cached-adj mismatch"

    print("KERNEL_OK")
</pallas_src>

<mosaic_0001>
module attributes {stable_mosaic.version = 11 : i64} {
  func.func @_support_kernel(%arg0: i32, %arg1: memref<128x32xf32, #tpu.memory_space<vmem>>, %arg2: memref<32x128xf32, #tpu.memory_space<vmem>>, %arg3: memref<128x128xf32, #tpu.memory_space<vmem>>) attributes {dimension_semantics = [#tpu.dimension_semantics<parallel>], iteration_bounds = array<i64: 1>, scalar_prefetch = 0 : i64, scratch_operands = 0 : i64, tpu.core_type = #tpu.core_type<tc>, window_params = [{transform_indices = @transform_0, window_bounds = array<i64: 128, 32>}, {pipeline_mode = #tpu.pipeline_mode<synchronous>, transform_indices = @transform_1, window_bounds = array<i64: 32, 128>}, {transform_indices = @transform_2, window_bounds = array<i64: 128, 128>}]} {
    %c0 = arith.constant 0 : index
    %c0_0 = arith.constant 0 : index
    %0 = vector.load %arg1[%c0, %c0_0] : memref<128x32xf32, #tpu.memory_space<vmem>>, vector<128x32xf32>
    %c0_1 = arith.constant 0 : index
    %c0_2 = arith.constant 0 : index
    %1 = vector.load %arg2[%c0_1, %c0_2] : memref<32x128xf32, #tpu.memory_space<vmem>>, vector<32x128xf32>
    %cst = arith.constant dense<0.000000e+00> : vector<128x128xf32>
    %2 = tpu.matmul %0, %1, %cst {dimension_numbers = #tpu.dot_dimension_numbers<[1], [0], [0], [1], [0, 0, 1, 1], [], []>} : vector<128x32xf32>, vector<32x128xf32>, vector<128x128xf32> -> vector<128x128xf32>
    %c0_3 = arith.constant 0 : index
    %c0_4 = arith.constant 0 : index
    %3 = vector.load %arg3[%c0_3, %c0_4] : memref<128x128xf32, #tpu.memory_space<vmem>>, vector<128x128xf32>
    tpu.vector_store %arg3[%c0_3, %c0_4], %2 {strides = array<i32>} : memref<128x128xf32, #tpu.memory_space<vmem>>, vector<128x128xf32>,
    return
  }
  func.func @transform_0(%arg0: i32) -> (i32, i32) {
    %c0_i32 = arith.constant 0 : i32
    %c0_i32_0 = arith.constant 0 : i32
    return %arg0, %c0_i32 : i32, i32
  }
  func.func @transform_1(%arg0: i32) -> (i32, i32) {
    %c0_i32 = arith.constant 0 : i32
    %c0_i32_0 = arith.constant 0 : i32
    %c0_i32_1 = arith.constant 0 : i32
    return %c0_i32, %c0_i32_0 : i32, i32
  }
  func.func @transform_2(%arg0: i32) -> (i32, i32) {
    %c0_i32 = arith.constant 0 : i32
    %c0_i32_0 = arith.constant 0 : i32
    return %arg0, %c0_i32 : i32, i32
  }
}

module attributes {stable_mosaic.version = 11 : i64} {
  func.func @_aggregate_kernel(%arg0: i32, %arg1: i32, %arg2: memref<128x128xf32, #tpu.memory_space<vmem>>, %arg3: memref<128x128xf32, #tpu.memory_space<vmem>>, %arg4: memref<1x128xf32, #tpu.memory_space<vmem>>, %arg5: memref<128x128xf32, #tpu.memory_space<vmem>>) attributes {dimension_semantics = [#tpu.dimension_semantics<parallel>, #tpu.dimension_semantics<arbitrary>], iteration_bounds = array<i64: 1, 1>, scalar_prefetch = 0 : i64, scratch_operands = 0 : i64, tpu.core_type = #tpu.core_type<tc>, window_params = [{transform_indices = @transform_0, window_bounds = array<i64: 128, 128>}, {transform_indices = @transform_1, window_bounds = array<i64: 128, 128>}, {pipeline_mode = #tpu.pipeline_mode<synchronous>, transform_indices = @transform_2, window_bounds = array<i64: 1, 128>}, {transform_indices = @transform_3, window_bounds = array<i64: 128, 128>}]} {
    %c0 = arith.constant 0 : index
    %c0_0 = arith.constant 0 : index
    %0 = vector.load %arg3[%c0, %c0_0] : memref<128x128xf32, #tpu.memory_space<vmem>>, vector<128x128xf32>
    %c0_1 = arith.constant 0 : index
    %c0_2 = arith.constant 0 : index
    %1 = vector.load %arg2[%c0_1, %c0_2] : memref<128x128xf32, #tpu.memory_space<vmem>>, vector<128x128xf32>
    %cst = arith.constant dense<0.000000e+00> : vector<128x128xf32>
    %2 = tpu.matmul %1, %0, %cst {dimension_numbers = #tpu.dot_dimension_numbers<[1], [0], [0], [1], [0, 0, 1, 1], [], []>} : vector<128x128xf32>, vector<128x128xf32>, vector<128x128xf32> -> vector<128x128xf32>
    %c0_i32 = arith.constant 0 : i32
    %3 = arith.cmpi eq, %arg1, %c0_i32 : i32
    %4 = arith.extui %3 : i1 to i32
    %c0_i32_3 = arith.constant 0 : i32
    %5 = arith.cmpi ne, %4, %c0_i32_3 : i32
    scf.if %5 {
      %c0_8 = arith.constant 0 : index
      %c0_9 = arith.constant 0 : index
      %12 = vector.load %arg5[%c0_8, %c0_9] : memref<128x128xf32, #tpu.memory_space<vmem>>, vector<128x128xf32>
      tpu.vector_store %arg5[%c0_8, %c0_9], %2 {strides = array<i32>} : memref<128x128xf32, #tpu.memory_space<vmem>>, vector<128x128xf32>,
    } else {
    }
    %c0_i32_4 = arith.constant 0 : i32
    %6 = arith.cmpi sgt, %arg1, %c0_i32_4 : i32
    %7 = arith.extui %6 : i1 to i32
    %c0_i32_5 = arith.constant 0 : i32
    %8 = arith.cmpi ne, %7, %c0_i32_5 : i32
    scf.if %8 {
      %c0_8 = arith.constant 0 : index
      %c0_9 = arith.constant 0 : index
      %12 = vector.load %arg5[%c0_8, %c0_9] : memref<128x128xf32, #tpu.memory_space<vmem>>, vector<128x128xf32>
      %13 = arith.addf %12, %2 : vector<128x128xf32>
      %c0_10 = arith.constant 0 : index
      %c0_11 = arith.constant 0 : index
      %14 = vector.load %arg5[%c0_10, %c0_11] : memref<128x128xf32, #tpu.memory_space<vmem>>, vector<128x128xf32>
      tpu.vector_store %arg5[%c0_10, %c0_11], %13 {strides = array<i32>} : memref<128x128xf32, #tpu.memory_space<vmem>>, vector<128x128xf32>,
    } else {
    }
    %c0_i32_6 = arith.constant 0 : i32
    %9 = arith.cmpi eq, %arg1, %c0_i32_6 : i32
    %10 = arith.extui %9 : i1 to i32
    %c0_i32_7 = arith.constant 0 : i32
    %11 = arith.cmpi ne, %10, %c0_i32_7 : i32
    scf.if %11 {
      %c0_8 = arith.constant 0 : index
      %c0_9 = arith.constant 0 : index
      %12 = vector.load %arg5[%c0_8, %c0_9] : memref<128x128xf32, #tpu.memory_space<vmem>>, vector<128x128xf32>
      %c0_10 = arith.constant 0 : index
      %c0_11 = arith.constant 0 : index
      %13 = vector.load %arg4[%c0_10, %c0_11] : memref<1x128xf32, #tpu.memory_space<vmem>>, vector<1x128xf32>
      %14 = vector.broadcast %13 : vector<1x128xf32> to vector<128x128xf32>
      %15 = arith.addf %12, %14 : vector<128x128xf32>
      %c0_12 = arith.constant 0 : index
      %c0_13 = arith.constant 0 : index
      %16 = vector.load %arg5[%c0_12, %c0_13] : memref<128x128xf32, #tpu.memory_space<vmem>>, vector<128x128xf32>
      tpu.vector_store %arg5[%c0_12, %c0_13], %15 {strides = array<i32>} : memref<128x128xf32, #tpu.memory_space<vmem>>, vector<128x128xf32>,
    } else {
    }
    return
  }
  func.func @transform_0(%arg0: i32, %arg1: i32) -> (i32, i32) {
    %c0_i32 = arith.constant 0 : i32
    return %arg0, %arg1 : i32, i32
  }
  func.func @transform_1(%arg0: i32, %arg1: i32) -> (i32, i32) {
    %c0_i32 = arith.constant 0 : i32
    %c0_i32_0 = arith.constant 0 : i32
    return %arg1, %c0_i32 : i32, i32
  }
  func.func @transform_2(%arg0: i32, %arg1: i32) -> (i32, i32) {
    %c0_i32 = arith.constant 0 : i32
    %c0_i32_0 = arith.constant 0 : i32
    %c0_i32_1 = arith.constant 0 : i32
    return %c0_i32, %c0_i32_0 : i32, i32
  }
  func.func @transform_3(%arg0: i32, %arg1: i32) -> (i32, i32) {
    %c0_i32 = arith.constant 0 : i32
    %c0_i32_0 = arith.constant 0 : i32
    return %arg0, %c0_i32 : i32, i32
  }
}

</mosaic_0001>

<bundles_post_ra>
// kernel: _graph_convolution_impl.3
= control target key start
LH: loop header
LB: loop body
LE: loop exit
PB: predicated region body
PF: predicated region fallthrough
CT: control target
= control target key end

     0   :  { %s458_s1 = inlined_call_operand.vmem [shape: f32[128,128], index: 1, kind: input, shape index: {}]   ;;  %s459_s2 = inlined_call_operand.vmem [shape: f32[1,128], index: 2, kind: input, shape index: {}]   ;;  %s460_s0 = inlined_call_operand.vmem [shape: f32[128,128], index: 0, kind: input, shape index: {}]   ;;  %s461_s3 = inlined_call_operand.vmem [shape: f32[128,128], index: 3, kind: output, shape index: {}]  }
   0x1   :  { %v29_v0 = vld [vmem:[%s458_s1 + $0x78] sm:$0xff]  ;;  %v28_v1 = vld [vmem:[%s458_s1 + $0x70] sm:$0xff]  ;;  %v27_v2 = vld [vmem:[%s458_s1 + $0x68] sm:$0xff] }
   0x2   :  { %243 = vmatpush.msra.mxu2 %v29_v0  ;;  %244 = vmatpush.msra.mxu3 %v29_v0  ;;  %v26_v3 = vld [vmem:[%s458_s1 + $0x60] sm:$0xff]  ;;  %v25_v4 = vld [vmem:[%s458_s1 + $0x58] sm:$0xff]  ;;  %v24_v5 = vld [vmem:[%s458_s1 + $0x50] sm:$0xff] }
   0x3   :  { %46 = vmatpush.msra.mxu0 %v29_v0  ;;  %242 = vmatpush.msra.mxu1 %v29_v0  ;;  %v23_v6 = vld [vmem:[%s458_s1 + $0x48] sm:$0xff]  ;;  %v22_v7 = vld [vmem:[%s458_s1 + $0x40] sm:$0xff]  ;;  %v21_v8 = vld [vmem:[%s458_s1 + $0x38] sm:$0xff] }
   0x4   :  { %246 = vmatpush.msra.mxu2 %v28_v1  ;;  %247 = vmatpush.msra.mxu3 %v28_v1  ;;  %v20_v9 = vld [vmem:[%s458_s1 + $0x30] sm:$0xff]  ;;  %v19_v10 = vld [vmem:[%s458_s1 + $0x28] sm:$0xff]  ;;  %v18_v11 = vld [vmem:[%s458_s1 + $0x20] sm:$0xff] }
   0x5   :  { %47 = vmatpush.msra.mxu0 %v28_v1  ;;  %245 = vmatpush.msra.mxu1 %v28_v1  ;;  %v17_v12 = vld [vmem:[%s458_s1 + $0x18] sm:$0xff]  ;;  %v16_v13 = vld [vmem:[%s458_s1 + $0x10] sm:$0xff]  ;;  %v15_v14 = vld [vmem:[%s458_s1 + $0x8] sm:$0xff] }
   0x6   :  { %249 = vmatpush.msra.mxu2 %v27_v2  ;;  %250 = vmatpush.msra.mxu3 %v27_v2  ;;  %v14_v15 = vld [vmem:[%s458_s1] sm:$0xff]  ;;  %v39_v20 = vld [vmem:[%s460_s0 + $0x48] sm:$0xff]  ;;  %v40_v24 = vld [vmem:[%s460_s0 + $0x50] sm:$0xff] }
   0x7   :  { %48 = vmatpush.msra.mxu0 %v27_v2  ;;  %248 = vmatpush.msra.mxu1 %v27_v2  ;;  %v38_v16 = vld [vmem:[%s460_s0 + $0x40] sm:$0xff]  ;;  %v43_v21 = vld [vmem:[%s460_s0 + $0x68] sm:$0xff]  ;;  %v44_v25 = vld [vmem:[%s460_s0 + $0x70] sm:$0xff] }
   0x8   :  { %252 = vmatpush.msra.mxu2 %v26_v3  ;;  %253 = vmatpush.msra.mxu3 %v26_v3  ;;  %v42_v17 = vld [vmem:[%s460_s0 + $0x60] sm:$0xff]  ;;  %v31_v22 = vld [vmem:[%s460_s0 + $0x8] sm:$0xff]  ;;  %v32_v26 = vld [vmem:[%s460_s0 + $0x10] sm:$0xff] }
   0x9   :  { %49 = vmatpush.msra.mxu0 %v26_v3  ;;  %251 = vmatpush.msra.mxu1 %v26_v3  ;;  %v30_v18 = vld [vmem:[%s460_s0] sm:$0xff]  ;;  %v35_v23 = vld [vmem:[%s460_s0 + $0x28] sm:$0xff]  ;;  %v36_v27 = vld [vmem:[%s460_s0 + $0x30] sm:$0xff] }
   0xa   :  { %255 = vmatpush.msra.mxu2 %v25_v4  ;;  %256 = vmatpush.msra.mxu3 %v25_v4  ;;  %v34_v19 = vld [vmem:[%s460_s0 + $0x20] sm:$0xff]  ;;  %v41_v28 = vld [vmem:[%s460_s0 + $0x58] sm:$0xff] }
   0xb   :  { %50 = vmatpush.msra.mxu0 %v25_v4  ;;  %254 = vmatpush.msra.mxu1 %v25_v4  ;;  %v45_v29 = vld [vmem:[%s460_s0 + $0x78] sm:$0xff]  ;;  %v290_v32 = vld [vmem:[%s459_s2] ss:$0 sm:$0xff] }
   0xc   :  { %258 = vmatpush.msra.mxu2 %v24_v5  ;;  %259 = vmatpush.msra.mxu3 %v24_v5  ;;  %v33_v30 = vld [vmem:[%s460_s0 + $0x18] sm:$0xff] }
   0xd   :  { %51 = vmatpush.msra.mxu0 %v24_v5  ;;  %257 = vmatpush.msra.mxu1 %v24_v5  ;;  %v37_v31 = vld [vmem:[%s460_s0 + $0x38] sm:$0xff] }
   0xe   :  { %261 = vmatpush.msra.mxu2 %v23_v6  ;;  %262 = vmatpush.msra.mxu3 %v23_v6 }
   0xf   :  { %52 = vmatpush.msra.mxu0 %v23_v6  ;;  %260 = vmatpush.msra.mxu1 %v23_v6 }
  0x10   :  { %264 = vmatpush.msra.mxu2 %v22_v7  ;;  %265 = vmatpush.msra.mxu3 %v22_v7 }
  0x11   :  { %53 = vmatpush.msra.mxu0 %v22_v7  ;;  %263 = vmatpush.msra.mxu1 %v22_v7 }
  0x12   :  { %267 = vmatpush.msra.mxu2 %v21_v8  ;;  %268 = vmatpush.msra.mxu3 %v21_v8 }
  0x13   :  { %54 = vmatpush.msra.mxu0 %v21_v8  ;;  %266 = vmatpush.msra.mxu1 %v21_v8 }
  0x14   :  { %270 = vmatpush.msra.mxu2 %v20_v9  ;;  %271 = vmatpush.msra.mxu3 %v20_v9 }
  0x15   :  { %55 = vmatpush.msra.mxu0 %v20_v9  ;;  %269 = vmatpush.msra.mxu1 %v20_v9 }
  0x16   :  { %273 = vmatpush.msra.mxu2 %v19_v10  ;;  %274 = vmatpush.msra.mxu3 %v19_v10 }
  0x17   :  { %56 = vmatpush.msra.mxu0 %v19_v10  ;;  %272 = vmatpush.msra.mxu1 %v19_v10 }
  0x18   :  { %276 = vmatpush.msra.mxu2 %v18_v11  ;;  %277 = vmatpush.msra.mxu3 %v18_v11 }
  0x19   :  { %57 = vmatpush.msra.mxu0 %v18_v11  ;;  %275 = vmatpush.msra.mxu1 %v18_v11 }
  0x1a   :  { %279 = vmatpush.msra.mxu2 %v17_v12  ;;  %280 = vmatpush.msra.mxu3 %v17_v12 }
  0x1b   :  { %58 = vmatpush.msra.mxu0 %v17_v12  ;;  %278 = vmatpush.msra.mxu1 %v17_v12 }
  0x1c   :  { %282 = vmatpush.msra.mxu2 %v16_v13  ;;  %283 = vmatpush.msra.mxu3 %v16_v13 }
  0x1d   :  { %59 = vmatpush.msra.mxu0 %v16_v13  ;;  %281 = vmatpush.msra.mxu1 %v16_v13 }
  0x1e   :  { %285 = vmatpush.msra.mxu2 %v15_v14  ;;  %286 = vmatpush.msra.mxu3 %v15_v14 }
  0x1f   :  { %60 = vmatpush.msra.mxu0 %v15_v14  ;;  %284 = vmatpush.msra.mxu1 %v15_v14 }
  0x20   :  { %288 = vmatpush.msra.mxu2 %v14_v15  ;;  %289 = vmatpush.msra.mxu3 %v14_v15 }
  0x21   :  { %86 = vmatmul.f32.vlgmr.msra.gmra.mxu2 %v38_v16  ;;  %98 = vmatmul.f32.vlgmr.msra.gmra.mxu3 %v42_v17 }
  0x22   :  { %61 = vmatpush.msra.mxu0 %v14_v15  ;;  %287 = vmatpush.msra.mxu1 %v14_v15 }
  0x23   :  { %62 = vmatmul.f32.vlgmr.msra.gmra.mxu0 %v30_v18  ;;  %74 = vmatmul.f32.vlgmr.msra.gmra.mxu1 %v34_v19 }
  0x29   :  { %89 = vmatmul.f32.gmra.mxu2 %v39_v20  ;;  %101 = vmatmul.f32.gmra.mxu3 %v43_v21 }
  0x2b   :  { %65 = vmatmul.f32.gmra.mxu0 %v31_v22  ;;  %77 = vmatmul.f32.gmra.mxu1 %v35_v23 }
  0x31   :  { %92 = vmatmul.f32.gmra.mxu2 %v40_v24  ;;  %104 = vmatmul.f32.gmra.mxu3 %v44_v25 }
  0x33   :  { %68 = vmatmul.f32.gmra.mxu0 %v32_v26  ;;  %80 = vmatmul.f32.gmra.mxu1 %v36_v27 }
  0x39   :  { %95 = vmatmul.f32.gmra.mxu2 %v41_v28  ;;  %107 = vmatmul.f32.gmra.mxu3 %v45_v29 }
  0x3b   :  { %71 = vmatmul.f32.gmra.mxu0 %v33_v30  ;;  %83 = vmatmul.f32.gmra.mxu1 %v37_v31 }
  0xa0   :  { %v63_v33 = vpop.f32.mrf.mxu0  ;;  %v75_v34 = vpop.f32.mrf.mxu1 }
  0xa1   :  { %v206_v35 = vadd.f32 %v290_v32, %v63_v33  ;;  %v210_v36 = vadd.f32 %v290_v32, %v75_v34 }
  0xa3   :  { %222 = vst [vmem:[%s461_s3] sm:$0xff] %v206_v35 }
  0xa4   :  { %226 = vst [vmem:[%s461_s3 + $0x20] sm:$0xff] %v210_v36  ;;  %v87_v37 = vpop.f32.mrf.mxu2  ;;  %v99_v38 = vpop.f32.mrf.mxu3 }
  0xa5   :  { %v214_v39 = vadd.f32 %v290_v32, %v87_v37  ;;  %v218_v40 = vadd.f32 %v290_v32, %v99_v38 }
  0xa7   :  { %230 = vst [vmem:[%s461_s3 + $0x40] sm:$0xff] %v214_v39 }
  0xa8   :  { %234 = vst [vmem:[%s461_s3 + $0x60] sm:$0xff] %v218_v40  ;;  %v66_v41 = vpop.f32.mrf.mxu0  ;;  %v78_v42 = vpop.f32.mrf.mxu1 }
  0xa9   :  { %v207_v43 = vadd.f32 %v290_v32, %v66_v41  ;;  %v211_v44 = vadd.f32 %v290_v32, %v78_v42 }
  0xab   :  { %223 = vst [vmem:[%s461_s3 + $0x8] sm:$0xff] %v207_v43 }
  0xac   :  { %227 = vst [vmem:[%s461_s3 + $0x28] sm:$0xff] %v211_v44  ;;  %v90_v45 = vpop.f32.mrf.mxu2  ;;  %v102_v46 = vpop.f32.mrf.mxu3 }
  0xad   :  { %v215_v47 = vadd.f32 %v290_v32, %v90_v45  ;;  %v219_v48 = vadd.f32 %v290_v32, %v102_v46 }
  0xaf   :  { %231 = vst [vmem:[%s461_s3 + $0x48] sm:$0xff] %v215_v47 }
  0xb0   :  { %235 = vst [vmem:[%s461_s3 + $0x68] sm:$0xff] %v219_v48  ;;  %v69_v49 = vpop.f32.mrf.mxu0  ;;  %v81_v50 = vpop.f32.mrf.mxu1 }
  0xb1   :  { %v208_v51 = vadd.f32 %v290_v32, %v69_v49  ;;  %v212_v52 = vadd.f32 %v290_v32, %v81_v50 }
  0xb3   :  { %224 = vst [vmem:[%s461_s3 + $0x10] sm:$0xff] %v208_v51 }
  0xb4   :  { %228 = vst [vmem:[%s461_s3 + $0x30] sm:$0xff] %v212_v52  ;;  %v93_v53 = vpop.f32.mrf.mxu2  ;;  %v105_v54 = vpop.f32.mrf.mxu3 }
  0xb5   :  { %v216_v55 = vadd.f32 %v290_v32, %v93_v53  ;;  %v220_v56 = vadd.f32 %v290_v32, %v105_v54 }
  0xb7   :  { %232 = vst [vmem:[%s461_s3 + $0x50] sm:$0xff] %v216_v55 }
  0xb8   :  { %236 = vst [vmem:[%s461_s3 + $0x70] sm:$0xff] %v220_v56  ;;  %v72_v57 = vpop.f32.mrf.mxu0  ;;  %v84_v58 = vpop.f32.mrf.mxu1 }
  0xb9   :  { %v209_v59 = vadd.f32 %v290_v32, %v72_v57  ;;  %v213_v60 = vadd.f32 %v290_v32, %v84_v58 }
  0xbb   :  { %225 = vst [vmem:[%s461_s3 + $0x18] sm:$0xff] %v209_v59 }
  0xbc   :  { %229 = vst [vmem:[%s461_s3 + $0x38] sm:$0xff] %v213_v60  ;;  %v96_v61 = vpop.f32.mrf.mxu2  ;;  %v108_v62 = vpop.f32.mrf.mxu3 }
  0xbd   :  { %v217_v63 = vadd.f32 %v290_v32, %v96_v61  ;;  %v221_v0 = vadd.f32 %v290_v32, %v108_v62 }
  0xbf   :  { %233 = vst [vmem:[%s461_s3 + $0x58] sm:$0xff] %v217_v63 }
  0xc0   :  { %237 = vst [vmem:[%s461_s3 + $0x78] sm:$0xff] %v221_v0 }

// kernel: _graph_convolution_impl.2
= control target key start
LH: loop header
LB: loop body
LE: loop exit
PB: predicated region body
PF: predicated region fallthrough
CT: control target
= control target key end

     0   :  { %vm31_vm0 = vcmask 261120   ;;  %s332_s1 = inlined_call_operand.vmem [shape: f32[32,128], index: 1, kind: input, shape index: {}]   ;;  %s333_s0 = inlined_call_operand.vmem [shape: f32[128,32], index: 0, kind: input, shape index: {}]   ;;  %s334_s2 = inlined_call_operand.vmem [shape: f32[128,128], index: 2, kind: output, shape index: {}]  }
   0x1   :  { %v30_v0 = vld [vmem:[%s332_s1 + $0x18] sm:$0xff]  ;;  %v29_v1 = vld [vmem:[%s332_s1 + $0x10] sm:$0xff]  ;;  %v28_v2 = vld [vmem:[%s332_s1 + $0x8] sm:$0xff] }
   0x2   :  { %182 = vmatpush.msra.mxu2 %v30_v0  ;;  %183 = vmatpush.msra.mxu3 %v30_v0  ;;  %v27_v3 = vld [vmem:[%s332_s1] sm:$0xff]  ;;  %v20_v8 = vld [vmem:[%s333_s0 + $0x48] sm:$0xff]  ;;  %v21_v12 = vld [vmem:[%s333_s0 + $0x50] sm:$0xff] }
   0x3   :  { %92 = vmatpush.msra.mxu0 %v30_v0  ;;  %181 = vmatpush.msra.mxu1 %v30_v0  ;;  %v19_v4 = vld [vmem:[%s333_s0 + $0x40] sm:$0xff]  ;;  %v24_v9 = vld [vmem:[%s333_s0 + $0x68] sm:$0xff]  ;;  %v25_v13 = vld [vmem:[%s333_s0 + $0x70] sm:$0xff] }
   0x4   :  { %185 = vmatpush.msra.mxu2 %v29_v1  ;;  %186 = vmatpush.msra.mxu3 %v29_v1  ;;  %v23_v5 = vld [vmem:[%s333_s0 + $0x60] sm:$0xff]  ;;  %v12_v10 = vld [vmem:[%s333_s0 + $0x8] sm:$0xff]  ;;  %v13_v14 = vld [vmem:[%s333_s0 + $0x10] sm:$0xff] }
   0x5   :  { %93 = vmatpush.msra.mxu0 %v29_v1  ;;  %184 = vmatpush.msra.mxu1 %v29_v1  ;;  %v11_v6 = vld [vmem:[%s333_s0] sm:$0xff]  ;;  %v16_v11 = vld [vmem:[%s333_s0 + $0x28] sm:$0xff]  ;;  %v17_v15 = vld [vmem:[%s333_s0 + $0x30] sm:$0xff] }
   0x6   :  { %188 = vmatpush.msra.mxu2 %v28_v2  ;;  %189 = vmatpush.msra.mxu3 %v28_v2  ;;  %v15_v7 = vld [vmem:[%s333_s0 + $0x20] sm:$0xff]  ;;  %v22_v16 = vld [vmem:[%s333_s0 + $0x58] sm:$0xff] }
   0x7   :  { %94 = vmatpush.msra.mxu0 %v28_v2  ;;  %187 = vmatpush.msra.mxu1 %v28_v2  ;;  %v26_v17 = vld [vmem:[%s333_s0 + $0x78] sm:$0xff] }
   0x8   :  { %191 = vmatpush.msra.mxu2 %v27_v3  ;;  %192 = vmatpush.msra.mxu3 %v27_v3  ;;  %v14_v18 = vld [vmem:[%s333_s0 + $0x18] sm:$0xff] }
   0x9   :  { %173 = vmatmul.msk.f32.vlgmr.msra.gmra.mxu2 %vm31_vm0, %v19_v4  ;;  %177 = vmatmul.msk.f32.vlgmr.msra.gmra.mxu3 %vm31_vm0, %v23_v5  ;;  %v18_v19 = vld [vmem:[%s333_s0 + $0x38] sm:$0xff] }
   0xa   :  { %95 = vmatpush.msra.mxu0 %v27_v3  ;;  %190 = vmatpush.msra.mxu1 %v27_v3 }
   0xb   :  { %165 = vmatmul.msk.f32.vlgmr.msra.gmra.mxu0 %vm31_vm0, %v11_v6  ;;  %169 = vmatmul.msk.f32.vlgmr.msra.gmra.mxu1 %vm31_vm0, %v15_v7 }
  0x11   :  { %174 = vmatmul.msk.f32.gmra.mxu2 %vm31_vm0, %v20_v8  ;;  %178 = vmatmul.msk.f32.gmra.mxu3 %vm31_vm0, %v24_v9 }
  0x13   :  { %166 = vmatmul.msk.f32.gmra.mxu0 %vm31_vm0, %v12_v10  ;;  %170 = vmatmul.msk.f32.gmra.mxu1 %vm31_vm0, %v16_v11 }
  0x19   :  { %175 = vmatmul.msk.f32.gmra.mxu2 %vm31_vm0, %v21_v12  ;;  %179 = vmatmul.msk.f32.gmra.mxu3 %vm31_vm0, %v25_v13 }
  0x1b   :  { %167 = vmatmul.msk.f32.gmra.mxu0 %vm31_vm0, %v13_v14  ;;  %171 = vmatmul.msk.f32.gmra.mxu1 %vm31_vm0, %v17_v15 }
  0x21   :  { %176 = vmatmul.msk.f32.gmra.mxu2 %vm31_vm0, %v22_v16  ;;  %180 = vmatmul.msk.f32.gmra.mxu3 %vm31_vm0, %v26_v17 }
  0x23   :  { %168 = vmatmul.msk.f32.gmra.mxu0 %vm31_vm0, %v14_v18  ;;  %172 = vmatmul.msk.f32.gmra.mxu1 %vm31_vm0, %v18_v19 }
  0x88   :  { %v97_v20 = vpop.f32.mrf.mxu0  ;;  %v109_v21 = vpop.f32.mrf.mxu1 }
  0x89   :  { %145 = vst [vmem:[%s334_s2] sm:$0xff] %v97_v20 }
  0x8a   :  { %149 = vst [vmem:[%s334_s2 + $0x20] sm:$0xff] %v109_v21 }
  0x8c   :  { %v121_v22 = vpop.f32.mrf.mxu2  ;;  %v133_v23 = vpop.f32.mrf.mxu3 }
  0x8d   :  { %153 = vst [vmem:[%s334_s2 + $0x40] sm:$0xff] %v121_v22 }
  0x8e   :  { %157 = vst [vmem:[%s334_s2 + $0x60] sm:$0xff] %v133_v23 }
  0x90   :  { %v100_v24 = vpop.f32.mrf.mxu0  ;;  %v112_v25 = vpop.f32.mrf.mxu1 }
  0x91   :  { %146 = vst [vmem:[%s334_s2 + $0x8] sm:$0xff] %v100_v24 }
  0x92   :  { %150 = vst [vmem:[%s334_s2 + $0x28] sm:$0xff] %v112_v25 }
  0x94   :  { %v124_v26 = vpop.f32.mrf.mxu2  ;;  %v136_v27 = vpop.f32.mrf.mxu3 }
  0x95   :  { %154 = vst [vmem:[%s334_s2 + $0x48] sm:$0xff] %v124_v26 }
  0x96   :  { %158 = vst [vmem:[%s334_s2 + $0x68] sm:$0xff] %v136_v27 }
  0x98   :  { %v103_v28 = vpop.f32.mrf.mxu0  ;;  %v115_v29 = vpop.f32.mrf.mxu1 }
  0x99   :  { %147 = vst [vmem:[%s334_s2 + $0x10] sm:$0xff] %v103_v28 }
  0x9a   :  { %151 = vst [vmem:[%s334_s2 + $0x30] sm:$0xff] %v115_v29 }
  0x9c   :  { %v127_v30 = vpop.f32.mrf.mxu2  ;;  %v139_v31 = vpop.f32.mrf.mxu3 }
  0x9d   :  { %155 = vst [vmem:[%s334_s2 + $0x50] sm:$0xff] %v127_v30 }
  0x9e   :  { %159 = vst [vmem:[%s334_s2 + $0x70] sm:$0xff] %v139_v31 }
  0xa0   :  { %v106_v32 = vpop.f32.mrf.mxu0  ;;  %v118_v33 = vpop.f32.mrf.mxu1 }
  0xa1   :  { %148 = vst [vmem:[%s334_s2 + $0x18] sm:$0xff] %v106_v32 }
  0xa2   :  { %152 = vst [vmem:[%s334_s2 + $0x38] sm:$0xff] %v118_v33 }
  0xa4   :  { %v130_v34 = vpop.f32.mrf.mxu2  ;;  %v142_v35 = vpop.f32.mrf.mxu3 }
  0xa5   :  { %156 = vst [vmem:[%s334_s2 + $0x58] sm:$0xff] %v130_v34 }
  0xa6   :  { %160 = vst [vmem:[%s334_s2 + $0x78] sm:$0xff] %v142_v35 }

</bundles_post_ra>
